<compile_context>
chip_gen: v7x
topology: tpu7x:2x2x1
jax: 0.10.0
libtpu: 0.0.40
codegen_flags: <defaults>
</compile_context>

<pallas_src>
import functools

import jax
import jax.numpy as jnp
from jax import lax
from jax.experimental import pallas as pl
from jax.experimental.pallas import tpu as pltpu

_LANE = 128
_SUB = 8
_MAX_TILE_ROWS = 2048  # (2048, 128) f32 = 1 MiB per input per pipeline buffer


def _dice_partial_kernel(x_ref, y_ref, out_ref, acc_inter, acc_den, *,
                         n_tiles, tile_rows, total, needs_elem_mask):
    c = pl.program_id(0)          # core-split axis ("parallel")
    k = pl.program_id(1)          # reduction axis ("arbitrary")
    spc = pl.num_programs(1)      # steps per core

    @pl.when(k == 0)
    def _():
        acc_inter[...] = jnp.zeros_like(acc_inter)
        acc_den[...] = jnp.zeros_like(acc_den)

    # Logical tile index: core 0 walks forward from tile 0, core 1 walks
    # backward from tile n_tiles-1 (keeps every block index in [0, n_tiles)).
    t = c * (n_tiles - 1) + (1 - 2 * c) * k
    # Ownership: core 0 owns tiles [0, spc), core 1 owns tiles [spc, n_tiles).
    owned = jnp.where(c == 0, t < spc, t >= spc)

    @pl.when(owned)
    def _():
        p = jax.nn.sigmoid(x_ref[...].astype(jnp.float32))
        lab = y_ref[...].astype(jnp.float32)
        inter = p * lab
        den = p + lab          # only sum(p) + sum(lab) is needed downstream

        if needs_elem_mask:
            # Mask the ragged tail / padded rows of the last tile.
            row = lax.broadcasted_iota(jnp.int32, (tile_rows, _LANE), 0)
            col = lax.broadcasted_iota(jnp.int32, (tile_rows, _LANE), 1)
            gidx = (t * tile_rows + row) * _LANE + col
            valid = gidx < total
            inter = jnp.where(valid, inter, 0.0)
            den = jnp.where(valid, den, 0.0)

        # Fold the (tile_rows, 128) tile into the vreg-shaped accumulators
        # with plain VALU adds (no per-step scalar XLU reduction).
        g = tile_rows // _SUB
        acc_inter[...] += jnp.sum(inter.reshape(g, _SUB, _LANE), axis=0)
        acc_den[...] += jnp.sum(den.reshape(g, _SUB, _LANE), axis=0)

    @pl.when(k == spc - 1)
    def _():
        out_ref[0, 0] = acc_inter[...]
        out_ref[0, 1] = acc_den[...]


def soft_dice_loss_v1(logits, labels):
    """Pallas TPU implementation of SoftDiceLoss_v1.forward."""
    assert logits.shape == labels.shape
    total = int(logits.size)

    flat_x = logits.reshape(-1)
    flat_y = labels.reshape(-1)

    chunk = _SUB * _LANE                       # 1024
    padded = total + ((-total) % chunk)
    if padded != total:
        # Rare path (numel not a multiple of 1024). Pad value is irrelevant:
        # padded elements are masked out inside the kernel.
        flat_x = jnp.pad(flat_x, (0, padded - total))
        flat_y = jnp.pad(flat_y, (0, padded - total))

    rows = padded // _LANE                     # multiple of 8
    x2 = flat_x.reshape(rows, _LANE)
    y2 = flat_y.reshape(rows, _LANE)

    tile_rows = min(_MAX_TILE_ROWS, rows)      # multiple of 8
    n_tiles = pl.cdiv(rows, tile_rows)
    steps_per_core = pl.cdiv(n_tiles, 2)

    needs_elem_mask = (padded != total) or (rows % tile_rows != 0)

    kernel = functools.partial(
        _dice_partial_kernel,
        n_tiles=n_tiles,
        tile_rows=tile_rows,
        total=total,
        needs_elem_mask=needs_elem_mask,
    )

    def in_map(c, k):
        # core 0: forward tiles k; core 1: backward tiles n_tiles-1-k.
        return (c * (n_tiles - 1) + (1 - 2 * c) * k, 0)

    partials = pl.pallas_call(
        kernel,
        out_shape=jax.ShapeDtypeStruct((2, 2, _SUB, _LANE), jnp.float32),
        grid_spec=pltpu.PrefetchScalarGridSpec(
            num_scalar_prefetch=0,
            grid=(2, steps_per_core),
            in_specs=[
                pl.BlockSpec((tile_rows, _LANE), in_map),
                pl.BlockSpec((tile_rows, _LANE), in_map),
            ],
            out_specs=pl.BlockSpec((1, 2, _SUB, _LANE),
                                   lambda c, k: (c, 0, 0, 0)),
            scratch_shapes=[
                pltpu.VMEM((_SUB, _LANE), jnp.float32),  # intersection acc
                pltpu.VMEM((_SUB, _LANE), jnp.float32),  # sum(p) + sum(lab)
            ],
        ),
        compiler_params=pltpu.CompilerParams(
            dimension_semantics=("parallel", "arbitrary")),
    )(x2, y2)

    inter = jnp.sum(partials[:, 0])
    den = jnp.sum(partials[:, 1])
    smooth = jnp.float32(1.0)
    score = (2.0 * inter + smooth) / (den + smooth)
    return jnp.float32(1.0) - score


def _reference(logits, labels):
    probs = jax.nn.sigmoid(logits.astype(jnp.float32))
    m1 = probs.reshape(-1)
    m2 = labels.astype(jnp.float32).reshape(-1)
    inter = jnp.sum(m1 * m2)
    score = (2.0 * inter + 1.0) / (jnp.sum(m1) + jnp.sum(m2) + 1.0)
    return 1.0 - score


if __name__ == "__main__":
    key = jax.random.PRNGKey(0)
    k1, k2 = jax.random.split(key)
    # NCHW, matching PyTorch convention
    logits = jax.random.normal(k1, (2, 4, 16, 16), dtype=jnp.float32)
    labels = (jax.random.uniform(k2, (2, 4, 16, 16)) > 0.5).astype(jnp.float32)

    loss = soft_dice_loss_v1(logits, labels)
    loss = jax.block_until_ready(loss)

    ref = _reference(logits, labels)
    assert jnp.allclose(loss, ref, atol=1e-5, rtol=1e-5), (loss, ref)

    print("KERNEL_OK")
</pallas_src>

<mosaic_0001>
module attributes {stable_mosaic.version = 11 : i64} {
  func.func @_dice_partial_kernel(%arg0: i32, %arg1: i32, %arg2: memref<16x128xf32, #tpu.memory_space<vmem>>, %arg3: memref<16x128xf32, #tpu.memory_space<vmem>>, %arg4: memref<1x2x8x128xf32, #tpu.memory_space<vmem>>, %arg5: memref<8x128xf32, #tpu.memory_space<vmem>>, %arg6: memref<8x128xf32, #tpu.memory_space<vmem>>) attributes {dimension_semantics = [#tpu.dimension_semantics<parallel>, #tpu.dimension_semantics<arbitrary>], iteration_bounds = array<i64: 2, 1>, scalar_prefetch = 0 : i64, scratch_operands = 2 : i64, tpu.core_type = #tpu.core_type<tc>, window_params = [{transform_indices = @transform_0, window_bounds = array<i64: 16, 128>}, {transform_indices = @transform_1, window_bounds = array<i64: 16, 128>}, {transform_indices = @transform_2, window_bounds = array<i64: 1, 2, 8, 128>}]} {
    %c0_i32 = arith.constant 0 : i32
    %0 = arith.cmpi eq, %arg1, %c0_i32 : i32
    %1 = arith.extui %0 : i1 to i32
    %c0_i32_0 = arith.constant 0 : i32
    %2 = arith.cmpi ne, %1, %c0_i32_0 : i32
    scf.if %2 {
      %cst = arith.constant 0.000000e+00 : f32
      %17 = vector.broadcast %cst : f32 to vector<8x128xf32>
      %c0 = arith.constant 0 : index
      %c0_8 = arith.constant 0 : index
      %18 = vector.load %arg5[%c0, %c0_8] : memref<8x128xf32, #tpu.memory_space<vmem>>, vector<8x128xf32>
      tpu.vector_store %arg5[%c0, %c0_8], %17 {strides = array<i32>} : memref<8x128xf32, #tpu.memory_space<vmem>>, vector<8x128xf32>,
      %cst_9 = arith.constant 0.000000e+00 : f32
      %19 = vector.broadcast %cst_9 : f32 to vector<8x128xf32>
      %c0_10 = arith.constant 0 : index
      %c0_11 = arith.constant 0 : index
      %20 = vector.load %arg6[%c0_10, %c0_11] : memref<8x128xf32, #tpu.memory_space<vmem>>, vector<8x128xf32>
      tpu.vector_store %arg6[%c0_10, %c0_11], %19 {strides = array<i32>} : memref<8x128xf32, #tpu.memory_space<vmem>>, vector<8x128xf32>,
    } else {
    }
    %c0_i32_1 = arith.constant 0 : i32
    %3 = arith.muli %arg0, %c0_i32_1 : i32
    %c2_i32 = arith.constant 2 : i32
    %4 = arith.muli %c2_i32, %arg0 : i32
    %c1_i32 = arith.constant 1 : i32
    %5 = arith.subi %c1_i32, %4 : i32
    %6 = arith.muli %5, %arg1 : i32
    %7 = arith.addi %3, %6 : i32
    %c0_i32_2 = arith.constant 0 : i32
    %8 = arith.cmpi eq, %arg0, %c0_i32_2 : i32
    %c1_i32_3 = arith.constant 1 : i32
    %9 = arith.cmpi slt, %7, %c1_i32_3 : i32
    %c1_i32_4 = arith.constant 1 : i32
    %10 = arith.cmpi sge, %7, %c1_i32_4 : i32
    %11 = arith.select %8, %9, %10 : i1
    %12 = arith.extui %11 : i1 to i32
    %c0_i32_5 = arith.constant 0 : i32
    %13 = arith.cmpi ne, %12, %c0_i32_5 : i32
    scf.if %13 {
      %c0 = arith.constant 0 : index
      %c0_8 = arith.constant 0 : index
      %17 = vector.load %arg2[%c0, %c0_8] : memref<16x128xf32, #tpu.memory_space<vmem>>, vector<16x128xf32>
      %18 = arith.negf %17 : vector<16x128xf32>
      %19 = math.exp %18 : vector<16x128xf32>
      %cst = arith.constant 1.000000e+00 : f32
      %20 = vector.broadcast %cst : f32 to vector<16x128xf32>
      %21 = arith.addf %20, %19 : vector<16x128xf32>
      %22 = arith.divf %20, %21 : vector<16x128xf32>
      %c0_9 = arith.constant 0 : index
      %c0_10 = arith.constant 0 : index
      %23 = vector.load %arg3[%c0_9, %c0_10] : memref<16x128xf32, #tpu.memory_space<vmem>>, vector<16x128xf32>
      %24 = arith.mulf %22, %23 : vector<16x128xf32>
      %25 = arith.addf %22, %23 : vector<16x128xf32>
      %c0_11 = arith.constant 0 : index
      %c0_12 = arith.constant 0 : index
      %26 = vector.load %arg5[%c0_11, %c0_12] : memref<8x128xf32, #tpu.memory_space<vmem>>, vector<8x128xf32>
      %27 = vector.shape_cast %24 : vector<16x128xf32> to vector<2x8x128xf32>
      %cst_13 = arith.constant dense<0.000000e+00> : vector<8x128xf32>
      %28 = vector.multi_reduction <add>, %27, %cst_13 [0] : vector<2x8x128xf32> to vector<8x128xf32>
      %29 = arith.addf %26, %28 : vector<8x128xf32>
      %c0_14 = arith.constant 0 : index
      %c0_15 = arith.constant 0 : index
      %30 = vector.load %arg5[%c0_14, %c0_15] : memref<8x128xf32, #tpu.memory_space<vmem>>, vector<8x128xf32>
      tpu.vector_store %arg5[%c0_14, %c0_15], %29 {strides = array<i32>} : memref<8x128xf32, #tpu.memory_space<vmem>>, vector<8x128xf32>,
      %c0_16 = arith.constant 0 : index
      %c0_17 = arith.constant 0 : index
      %31 = vector.load %arg6[%c0_16, %c0_17] : memref<8x128xf32, #tpu.memory_space<vmem>>, vector<8x128xf32>
      %32 = vector.shape_cast %25 : vector<16x128xf32> to vector<2x8x128xf32>
      %cst_18 = arith.constant dense<0.000000e+00> : vector<8x128xf32>
      %33 = vector.multi_reduction <add>, %32, %cst_18 [0] : vector<2x8x128xf32> to vector<8x128xf32>
      %34 = arith.addf %31, %33 : vector<8x128xf32>
      %c0_19 = arith.constant 0 : index
      %c0_20 = arith.constant 0 : index
      %35 = vector.load %arg6[%c0_19, %c0_20] : memref<8x128xf32, #tpu.memory_space<vmem>>, vector<8x128xf32>
      tpu.vector_store %arg6[%c0_19, %c0_20], %34 {strides = array<i32>} : memref<8x128xf32, #tpu.memory_space<vmem>>, vector<8x128xf32>,
    } else {
    }
    %c0_i32_6 = arith.constant 0 : i32
    %14 = arith.cmpi eq, %arg1, %c0_i32_6 : i32
    %15 = arith.extui %14 : i1 to i32
    %c0_i32_7 = arith.constant 0 : i32
    %16 = arith.cmpi ne, %15, %c0_i32_7 : i32
    scf.if %16 {
      %c0 = arith.constant 0 : index
      %c0_8 = arith.constant 0 : index
      %17 = vector.load %arg5[%c0, %c0_8] : memref<8x128xf32, #tpu.memory_space<vmem>>, vector<8x128xf32>
      %c0_9 = arith.constant 0 : index
      %c0_10 = arith.constant 0 : index
      %c0_11 = arith.constant 0 : index
      %c0_12 = arith.constant 0 : index
      %18 = vector.load %arg4[%c0_9, %c0_10, %c0_11, %c0_12] : memref<1x2x8x128xf32, #tpu.memory_space<vmem>>, vector<1x1x8x128xf32>
      %19 = vector.shape_cast %18 : vector<1x1x8x128xf32> to vector<8x128xf32>
      %20 = vector.shape_cast %17 : vector<8x128xf32> to vector<1x1x8x128xf32>
      tpu.vector_store %arg4[%c0_9, %c0_10, %c0_11, %c0_12], %20 {strides = array<i32>} : memref<1x2x8x128xf32, #tpu.memory_space<vmem>>, vector<1x1x8x128xf32>,
      %c0_13 = arith.constant 0 : index
      %c0_14 = arith.constant 0 : index
      %21 = vector.load %arg6[%c0_13, %c0_14] : memref<8x128xf32, #tpu.memory_space<vmem>>, vector<8x128xf32>
      %c0_15 = arith.constant 0 : index
      %c1 = arith.constant 1 : index
      %c0_16 = arith.constant 0 : index
      %c0_17 = arith.constant 0 : index
      %22 = vector.load %arg4[%c0_15, %c1, %c0_16, %c0_17] : memref<1x2x8x128xf32, #tpu.memory_space<vmem>>, vector<1x1x8x128xf32>
      %23 = vector.shape_cast %22 : vector<1x1x8x128xf32> to vector<8x128xf32>
      %24 = vector.shape_cast %21 : vector<8x128xf32> to vector<1x1x8x128xf32>
      tpu.vector_store %arg4[%c0_15, %c1, %c0_16, %c0_17], %24 {strides = array<i32>} : memref<1x2x8x128xf32, #tpu.memory_space<vmem>>, vector<1x1x8x128xf32>,
    } else {
    }
    return
  }
  func.func @transform_0(%arg0: i32, %arg1: i32) -> (i32, i32) {
    %c0_i32 = arith.constant 0 : i32
    %0 = arith.muli %arg0, %c0_i32 : i32
    %c2_i32 = arith.constant 2 : i32
    %1 = arith.muli %c2_i32, %arg0 : i32
    %c1_i32 = arith.constant 1 : i32
    %2 = arith.subi %c1_i32, %1 : i32
    %3 = arith.muli %2, %arg1 : i32
    %4 = arith.addi %0, %3 : i32
    %c0_i32_0 = arith.constant 0 : i32
    %c0_i32_1 = arith.constant 0 : i32
    return %4, %c0_i32_0 : i32, i32
  }
  func.func @transform_1(%arg0: i32, %arg1: i32) -> (i32, i32) {
    %c0_i32 = arith.constant 0 : i32
    %0 = arith.muli %arg0, %c0_i32 : i32
    %c2_i32 = arith.constant 2 : i32
    %1 = arith.muli %c2_i32, %arg0 : i32
    %c1_i32 = arith.constant 1 : i32
    %2 = arith.subi %c1_i32, %1 : i32
    %3 = arith.muli %2, %arg1 : i32
    %4 = arith.addi %0, %3 : i32
    %c0_i32_0 = arith.constant 0 : i32
    %c0_i32_1 = arith.constant 0 : i32
    return %4, %c0_i32_0 : i32, i32
  }
  func.func @transform_2(%arg0: i32, %arg1: i32) -> (i32, i32, i32, i32) {
    %c0_i32 = arith.constant 0 : i32
    %c0_i32_0 = arith.constant 0 : i32
    %c0_i32_1 = arith.constant 0 : i32
    %c0_i32_2 = arith.constant 0 : i32
    return %arg0, %c0_i32, %c0_i32_0, %c0_i32_1 : i32, i32, i32, i32
  }
}

</mosaic_0001>

<bundles_post_ra>
// kernel: tpu_custom_call.1
= control target key start
LH: loop header
LB: loop body
LE: loop exit
PB: predicated region body
PF: predicated region fallthrough
CT: control target
= control target key end

     0   :  { %7 = vsyncpa [#allocation5], 0  ;;  %s881_s0 = inlined_call_operand.hbm [shape: f32[16,128], index: 0, kind: input, shape index: {}]   ;;  %s882_s1 = inlined_call_operand.hbm [shape: f32[16,128], index: 1, kind: input, shape index: {}]   ;;  %s883_s2 = inlined_call_operand.hbm [shape: f32[2,2,8,128], index: 2, kind: output, shape index: {}]  }
   0x1   :  { %9 = vsyncpa [#allocation5 + $0x1], 0 }
   0x2   :  { %10 = vsyncpa [#allocation8], 0 }
   0x3   :  { %12 = vsyncpa [#allocation8 + $0x1], 0 }
   0x4   :  { %13 = vsyncpa [#allocation6], 0 }
   0x5   :  { %15 = vsyncpa [#allocation6 + $0x1], 0  ;;  %s697_s9 = smov 0   ;;  %s699_s10 = smov 0  }
   0x6   :  { %s701_s11 = smov 0   ;;  %s703_s12 = smov 0  }
   0x7   :  { %s705_s13 = smov 0   ;;  %s707_s14 = smov 0  }
   0x8 LB: > { %s413_s15 = sadd.s32 4294967295, %s672_s14   ;;  %s414_s16 = sadd.s32 4294967294, %s672_s14   ;;  %s672_s14 = sphi %s707_s14, %s21_s14   ;;  %s668_s13 = sphi %s705_s13, %s899_s13   ;;  %s664_s12 = sphi %s703_s12, %s898_s12   ;;  %s660_s11 = sphi %s701_s11, %s897_s11   ;;  %s656_s10 = sphi %s699_s10, %s896_s10   ;;  %s652_s9 = sphi %s697_s9, %s895_s9  }
   0x9   : > { %s33_s17 = sadd.s32 1, %s668_s13  ;;  %s104_s18 = sadd.s32 1, %s660_s11 }
   0xa   : > { %p35_p0 = scmp.ge.s32.totalorder %s33_s17, 2  ;;  %p114_p1 = scmp.ne.s32.totalorder %s660_s11, %s656_s10 }
   0xb   : > { %p115_p2 = scmp.eq.s32.totalorder %s413_s15, 1  ;;  %p120_p3 = scmp.ne.s32.totalorder %s656_s10, %s652_s9 }
   0xc   : > { %s901_s17 = smov (%p35_p0, %s33_s17), 0  ;;  %p121_p5 = scmp.eq.s32.totalorder %s414_s16, 1 }
   0xd   : > { %p739_p4 = por %p115_p2, %p114_p1  ;;  %s101_s20 = ssub.s32 %s668_s13, %s901_s17 }
   0xe   : > { %p102_p7 = scmp.eq.s32.totalorder %s101_s20, 0  ;;  %p746_p8 = por %p121_p5, %p120_p3 }
   0xf   : > { %s885_s19 = scalar_select %p739_p4, 1, 0 }
  0x10   : > { %s886_s21 = scalar_select %p746_p8, 1, 0 }
  0x11   : > { %p461_p9 = scmp.lt.s32.totalorder %s672_s14, 2  ;;  %p462_p10 = scmp.eq.s32.totalorder %s672_s14, 0 }
  0x12   : > { %s752_s22 = scalar_select %p102_p7, %s660_s11, %s104_s18  }
  0x13   : > { %s674_s23 = smov [#allocation4]   ;;  %p755_p11 = pnand %p462_p10, %p461_p9 }
  0x14   : > { %s155_s24 = sshll.u32 %s674_s23, 4  ;;  %s530_s28 = scalar_lea.hbm %s881_s0, 256  ;;  %s156_s24 = int_to_ptr.vmem [resolvable:$true] %s155_s24 }
  0x15   : > { %p531_p0 = scmp.ne.s32.totalorder %s881_s0, %s530_s28  ;;  %p532_p1 = pneg %p755_p11 }
  0x16   : > { %p537_p5 = scmp.lt.u32.totalorder %s530_s28, %s881_s0 }
  0x17   : > { %p533_p2 = pnand %p532_p1, %p531_p0 }
  0x19   : > { %p534_p3 = pneg %p533_p2 }
  0x1b   : > { %p539_p7 = pnand %p537_p5, %p534_p3 }
  0x1d   : > { %542 = shalt.err (!%p539_p7)
}
  0x1e   : > { %s543_s5 = scalar_lea.vmem %s156_s24, 256  ;;  %s550_s6 = scalar_lea.vmem %s156_s24, 512 }
  0x1f   : > { %p544_p9 = scmp.ne.s32.totalorder %s156_s24, %s543_s5  ;;  %p551_p12 = scmp.lt.s32.totalorder %s156_s24, %s156_s24 }
  0x20   : > { %p552_p13 = scmp.lt.s32.totalorder %s550_s6, %s543_s5 }
  0x21   : > { %p546_p10 = pnand %p544_p9, %p532_p1 }
  0x22   : > { %p553_p8 = por %p552_p13, %p551_p12 }
  0x23   : > { %p547_p6 = pneg %p546_p10 }
  0x25   : > { %p554_p4 = pnand %p553_p8, %p547_p6 }
  0x27   : > { %557 = shalt.err (!%p554_p4)
}
  0x28   : > { %s675_s7 = smov 128   ;;  %s676_s8 = smov 8  }
  0x29   : > { %453 = dma.hbm_to_vmem [thread:$0]  (!%p755_p11), %s881_s0, 256, %s156_s24, [#allocation5], %s675_s7, %s675_s7, %s676_s8  }
  0x2a   : > { %p888_p0 = scmp.lt.s32.totalorder %s672_s14, 3  ;;  %p889_p2 = scmp.ge.s32.totalorder %s672_s14, 1 }
  0x2b   : > { %s677_s23 = smov [#allocation7]   ;;  %s558_s29 = scalar_lea.hbm %s882_s1, 256 }
  0x2c   : > { %p787_p3 = pnand %p889_p2, %p888_p0  ;;  %s179_s26 = sshll.u32 %s677_s23, 4  ;;  %s180_s26 = int_to_ptr.vmem [resolvable:$true] %s179_s26 }
  0x2d   : > { %p559_p4 = scmp.ne.s32.totalorder %s882_s1, %s558_s29  ;;  %p565_p12 = scmp.lt.u32.totalorder %s558_s29, %s882_s1 }
  0x2e   : > { %s890_s20 = scalar_select %p787_p3, 1, 0 }
  0x2f   : > { %p561_p6 = pnand %p559_p4, %p532_p1 }
  0x31   : > { %p562_p8 = pneg %p561_p6 }
  0x33   : > { %p567_p13 = pnand %p565_p12, %p562_p8 }
  0x35   : > { %570 = shalt.err (!%p567_p13)
}
  0x36   : > { %s571_s5 = scalar_lea.vmem %s180_s26, 256  ;;  %s578_s6 = scalar_lea.vmem %s180_s26, 512 }
  0x37   : > { %p572_p5 = scmp.ne.s32.totalorder %s180_s26, %s571_s5  ;;  %p579_p10 = scmp.lt.s32.totalorder %s180_s26, %s180_s26 }
  0x38   : > { %p580_p0 = scmp.lt.s32.totalorder %s578_s6, %s571_s5 }
  0x39   : > { %p574_p7 = pnand %p572_p5, %p532_p1 }
  0x3a   : > { %p581_p2 = por %p580_p0, %p579_p10 }
  0x3b   : > { %p575_p9 = pneg %p574_p7 }
  0x3d   : > { %p582_p3 = pnand %p581_p2, %p575_p9 }
  0x3f   : > { %585 = shalt.err (!%p582_p3)
}
  0x40   : > { %456 = dma.hbm_to_vmem [thread:$0]  (!%p755_p11), %s882_s1, 256, %s180_s26, [#allocation8], %s675_s7, %s675_s7, %s676_s8  }
  0x41   : > { %p891_p4 = scmp.ne.s32.totalorder %s890_s20, 0 }
  0x42   : > { %p464_p6 = scmp.eq.s32.totalorder (!%p891_p4), %s413_s15, 0 }
  0x43   : > { %191 = sbr.rel (%p891_p4) target bundleno = 139 (0x8b), region = 28 }
  0x4a   : > { %639 = dma.done.wait (%p464_p6), [#allocation5], 256  }
  0x4b   : > { %641 = vsyncadd (%p464_p6), [#allocation5], 4294967040 }
  0x4c   : > { %643 = dma.done.wait (%p464_p6), [#allocation8], 256  }
  0x4d   : > { %645 = vsyncadd (%p464_p6), [#allocation8], 4294967040  ;;  %s229_s23 = sand.u32 1, %s656_s10   ;;  %v678_v0 = vmov 0.0   ;;  %p430_p11 = scmp.ne.s32.totalorder %s664_s12, 0 }
  0x4e   : > { %s428_s27 = sshll.u32 %s229_s23, 4  ;;  %244 = vst [vmem:[#allocation2] sm:$0xff] %v678_v0  ;;  %245 = vst [vmem:[#allocation3] sm:$0xff] %v678_v0  ;;  %v259_v1 = vld [vmem:[#allocation4] sm:$0xff] (!%p430_p11)  ;;  %v260_v2 = vld [vmem:[#allocation4 + $0x8] sm:$0xff] (!%p430_p11) }
  0x4f   : > { %s818_s25 = scalar_lea.vmem [#allocation9], %s428_s27  ;;  %258 = sbr.rel (%p430_p11) target bundleno = 113 (0x71), region = 44  ;;  %v431_v3 = vmul.f32 (!%p430_p11), -1.442695, %v259_v1  ;;  %v432_v4 = vmul.f32 (!%p430_p11), -1.442695, %v260_v2 }
  0x50   : > { %v273_v9 = vld [vmem:[#allocation7] sm:$0xff] (!%p430_p11)  ;;  %v274_v10 = vld [vmem:[#allocation7 + $0x8] sm:$0xff] (!%p430_p11) }
  0x51   : > { %522 = vpow2.f32 (!%p430_p11), %v431_v3 }
  0x52   : > { %524 = vpow2.f32 (!%p430_p11), %v432_v4 }
  0x55   : > { %v279_v17 = vld [vmem:[#allocation2] sm:$0xff] (!%p430_p11)  ;;  %v283_v18 = vld [vmem:[#allocation3] sm:$0xff] (!%p430_p11) }
  0x5b   : > { %v523_v5 = vpop.eup %522 }
  0x5c   : > { %v525_v6 = vpop.eup %524  ;;  %v267_v7 = vadd.f32 1.0, %v523_v5 }
  0x5d   : > { %v268_v8 = vadd.f32 1.0, %v525_v6 }
  0x5e   : > { %526 = vrcp.f32 %v267_v7 }
  0x5f   : > { %528 = vrcp.f32 %v268_v8 }
  0x68   : > { %v527_v11 = vpop.eup %526 }
  0x69   : > { %v529_v12 = vpop.eup %528  ;;  %v275_v13 = vmul.f32 %v527_v11, %v273_v9  ;;  %v277_v14 = vadd.f32 %v527_v11, %v273_v9 }
  0x6a   : > { %v276_v15 = vmul.f32 %v529_v12, %v274_v10  ;;  %v278_v16 = vadd.f32 %v529_v12, %v274_v10 }
  0x6c   : > { %v280_v19 = vadd.f32 %v276_v15, %v275_v13  ;;  %v284_v20 = vadd.f32 %v278_v16, %v277_v14 }
  0x6e   : > { %v281_v21 = vadd.f32 %v280_v19, %v279_v17  ;;  %v285_v22 = vadd.f32 %v284_v20, %v283_v18 }
  0x70   : > { %282 = vst [vmem:[#allocation2] sm:$0xff] %v281_v21  ;;  %286 = vst [vmem:[#allocation3] sm:$0xff] %v285_v22 }
  0x71 PF: > { %s439_s15 = sshll.u32 %s664_s12, 8  ;;  %s309_s26 = sshll.u32 %s818_s25, 4  ;;  %s830_s26 = int_to_ptr.vmem [resolvable:$true] %s309_s26 }
  0x72   : > { %s827_s20 = scalar_lea.hbm %s883_s2, %s439_s15  ;;  %s834_s28 = scalar_lea.sflag [#allocation6], %s229_s23 }
  0x73   : > { %s586_s29 = scalar_lea.vmem %s830_s26, 256  ;;  %p892_p3 = scmp.ne.s32.totalorder %s885_s19, 0 }
  0x74   : > { %p587_p1 = scmp.ne.s32.totalorder %s830_s26, %s586_s29  ;;  %s679_s12 = smov [#allocation9]  }
  0x75   : > { %s590_s30 = sshll.u32 %s679_s12, 4  ;;  %s591_s30 = int_to_ptr.vmem [resolvable:$false] %s590_s30 }
  0x76   : > { %p588_p8 = pnand %p587_p1, %p892_p3  ;;  %s592_s3 = scalar_lea.vmem %s591_s30, 512 }
  0x77   : > { %v290_v23 = vld [vmem:[#allocation2] sm:$0xff]  ;;  %v292_v24 = vld [vmem:[#allocation3] sm:$0xff]  ;;  %p593_p13 = scmp.lt.s32.totalorder %s830_s26, %s591_s30  ;;  %p594_p5 = scmp.lt.s32.totalorder %s592_s3, %s586_s29 }
  0x78   : > { %291 = vst [vmem:[%s818_s25] sm:$0xff] %v290_v23  ;;  %433 = vst [vmem:[%s818_s25 + $0x8] sm:$0xff] %v292_v24  ;;  %p589_p12 = pneg %p588_p8 }
  0x79   : > { %p595_p7 = por %p594_p5, %p593_p13 }
  0x7b   : > { %p596_p9 = pnand %p595_p7, %p589_p12 }
  0x7d   : > { %599 = shalt.err (!%p596_p9)
}
  0x7e   : > { %s600_s24 = scalar_lea.hbm %s827_s20, 256  ;;  %s604_s6 = scalar_lea.hbm %s883_s2, 512 }
  0x7f   : > { %p601_p10 = scmp.ne.s32.totalorder %s827_s20, %s600_s24  ;;  %p605_p4 = scmp.lt.u32.totalorder %s827_s20, %s883_s2 }
  0x80   : > { %p606_p6 = scmp.lt.u32.totalorder %s604_s6, %s600_s24  ;;  %p608_p1 = scmp.lt.u32.totalorder %s600_s24, %s827_s20 }
  0x81   : > { %p602_p0 = pnand %p601_p10, %p892_p3 }
  0x82   : > { %p607_p11 = por %p606_p6, %p605_p4 }
  0x83   : > { %p603_p2 = pneg %p602_p0 }
  0x84   : > { %p609_p8 = por %p608_p1, %p607_p11 }
  0x86   : > { %p610_p12 = pnand %p609_p8, %p603_p2 }
  0x88   : > { %613 = shalt.err (!%p610_p12)
}
  0x89   : > { %s680_s23 = smov 128   ;;  %s681_s27 = smov 8  }
  0x8a   : > { %448 = dma.vmem_to_hbm [thread:$0]  (%p892_p3), %s830_s26, 256, %s827_s20, %s834_s28, %s680_s23, %s680_s23, %s681_s27  }
  0x8b PF: > { %s324_s25 = sand.u32 1, %s652_s9   ;;  %p893_p13 = scmp.ne.s32.totalorder %s886_s21, 0 }
  0x8c   : > { %p894_p5 = scmp.ge.s32.totalorder %s672_s14, 2  ;;  %s325_s15 = scalar_lea.sflag [#allocation6], %s324_s25 }
  0x8e   : > { %p458_p7 = pnand %p894_p5, %p893_p13 }
  0x90   : > { %647 = dma.done.wait (!%p458_p7), %s325_s15, 256  }
  0x91   : > { %649 = vsyncadd (!%p458_p7), %s325_s15, 4294967040  ;;  %s21_s14 = sadd.s32 1, %s672_s14   ;;  %s895_s9 = smov %s656_s10 }
  0x92   : > { %p18_p9 = scmp.ge.s32.totalorder %s21_s14, 4   ;;  %s896_s10 = smov %s660_s11 }
  0x93   : > { %s897_s11 = smov %s752_s22  ;;  %s898_s12 = smov %s668_s13 }
  0x94   : > { %s899_s13 = smov %s901_s17  ;;  %20 = sbr.rel (!%p18_p9) target bundleno = 8 (0x8), region = 99 }
  0x9b   :  { %330 = vsyncpa [#allocation5], 1 }
  0x9c   :  { %332 = vsyncpa [#allocation5 + $0x1], 1 }
  0x9d   :  { %333 = vsyncpa [#allocation8], 1 }
  0x9e   :  { %335 = vsyncpa [#allocation8 + $0x1], 1 }
  0x9f   :  { %336 = vsyncpa [#allocation6], 1 }
  0xa0   :  { %338 = vsyncpa [#allocation6 + $0x1], 1 }

</bundles_post_ra>
